<compile_context>
chip_gen: v5e
topology: v5e:2x2
jax: 0.10.0
libtpu: 0.0.40
codegen_flags: <defaults>
</compile_context>

<pallas_src>
import jax
import jax.numpy as jnp
from jax.experimental import pallas as pl
from jax.experimental.pallas import tpu as pltpu

B   = 256    # batch rows per pallas_call
DX  = 128    # x feature dim
DY  = 128    # y feature dim
H   = 128    # hidden dim (output of m1)
OUT = 128    # output dim (output of m2)


def two_one_kernel(x_ref, y_ref, w1_ref, w2_ref, b1_ref, w3_ref, b3_ref, o_ref):
    # Casts to bf16 happen here (VPU, hidden under the tile DMAs) so the
    # wrapper issues zero extra XLA ops.
    xb  = x_ref[...].astype(jnp.bfloat16)
    yb  = y_ref[...].astype(jnp.bfloat16)
    w1b = w1_ref[...].astype(jnp.bfloat16)
    w2b = w2_ref[...].astype(jnp.bfloat16)
    w3b = w3_ref[...].astype(jnp.bfloat16)

    # m1: r = x @ W1 + y @ W2 + b1 -- two K=128 bf16 MXU dots, f32 accumulation,
    # bias add in f32 on the VPU.
    r = (jnp.dot(xb, w1b, preferred_element_type=jnp.float32)
         + jnp.dot(yb, w2b, preferred_element_type=jnp.float32)
         + b1_ref[...])

    # m2: out = relu(r @ W3 + b3) -- bf16 operands, f32 accumulation.
    out = (jnp.dot(r.astype(jnp.bfloat16), w3b,
                   preferred_element_type=jnp.float32)
           + b3_ref[...])
    o_ref[...] = jnp.maximum(out, 0.0).astype(o_ref.dtype)


def _default_batch_tile(n_rows):
    # v7x has 2 TensorCores/chip: keep >= 2 grid steps so "parallel" shards the
    # batch across cores. v5e/v6e are single-TC: the grid is a sequential loop,
    # so take the whole batch in one step and skip the per-step overhead.
    try:
        kind = jax.devices()[0].device_kind.lower()
        num_cores = 2 if "v7" in kind else 1
    except Exception:  # conservative fallback
        num_cores = 1
    tb = n_rows if num_cores == 1 else max(8, n_rows // num_cores)
    while n_rows % tb != 0 and tb > 8:
        tb //= 2
    return tb


def two_one_sequential(x, y, w1, w2, b1, w3, b3, *, tb=None):
    # All operands are passed through untouched -- no wrapper-side concat/cast.
    n_rows, dx = x.shape
    dy = y.shape[1]
    h = w1.shape[1]
    n_out = w3.shape[1]

    if tb is None:
        tb = _default_batch_tile(n_rows)
    assert n_rows % tb == 0

    return pl.pallas_call(
        two_one_kernel,
        out_shape=jax.ShapeDtypeStruct((n_rows, n_out), jnp.float32),
        grid=(n_rows // tb,),
        in_specs=[
            pl.BlockSpec((tb, dx),     lambda i: (i, 0)),   # x batch tile
            pl.BlockSpec((tb, dy),     lambda i: (i, 0)),   # y batch tile
            pl.BlockSpec((dx, h),      lambda i: (0, 0)),   # W1 (resident)
            pl.BlockSpec((dy, h),      lambda i: (0, 0)),   # W2 (resident)
            pl.BlockSpec((1, h),       lambda i: (0, 0)),   # b1 (resident)
            pl.BlockSpec((h, n_out),   lambda i: (0, 0)),   # W3 (resident)
            pl.BlockSpec((1, n_out),   lambda i: (0, 0)),   # b3 (resident)
        ],
        out_specs=pl.BlockSpec((tb, n_out), lambda i: (i, 0)),
        compiler_params=pltpu.CompilerParams(
            dimension_semantics=("parallel",)),  # shards batch tiles on v7x
    )(x, y, w1, w2, b1, w3, b3)


if __name__ == "__main__":
    key = jax.random.PRNGKey(0)
    kx, ky, k1, k2, kb1, k3, kb3 = jax.random.split(key, 7)

    x = jax.random.normal(kx, (B, DX), dtype=jnp.float32)
    y = jax.random.normal(ky, (B, DY), dtype=jnp.float32)

    # PyTorch-Linear-style uniform init, deterministic.
    def lin_init(k, fan_in, shape):
        bound = 1.0 / jnp.sqrt(fan_in)
        return jax.random.uniform(k, shape, jnp.float32, -bound, bound)

    w1 = lin_init(k1, DX, (DX, H))
    w2 = lin_init(k2, DY, (DY, H))
    b1 = lin_init(kb1, DX, (1, H))        # kept 2-D for lane-dense TPU layout
    w3 = lin_init(k3, H, (H, OUT))
    b3 = lin_init(kb3, H, (1, OUT))

    out = jax.block_until_ready(two_one_sequential(x, y, w1, w2, b1, w3, b3))
    assert out.shape == (B, OUT)

    # Reference mirroring the kernel's precision policy
    # (bf16 operand rounding, f32 accumulation, f32 bias/ReLU).
    def bf(a):
        return a.astype(jnp.bfloat16).astype(jnp.float32)
    r_bf = bf(x) @ bf(w1) + bf(y) @ bf(w2) + b1
    ref_bf = jnp.maximum(bf(r_bf) @ bf(w3) + b3, 0.0)
    assert jnp.allclose(out, ref_bf, atol=2e-3, rtol=2e-3)

    # Full-precision module semantics: r = x@W1 + y@W2 + b1; out = relu(r@W3 + b3)
    ref_f32 = jnp.maximum((x @ w1 + y @ w2 + b1) @ w3 + b3, 0.0)
    assert jnp.allclose(out, ref_f32, atol=5e-2, rtol=5e-2)

    print("KERNEL_OK")
</pallas_src>

<mosaic_0001>
module attributes {stable_mosaic.version = 11 : i64} {
  func.func @two_one_kernel(%arg0: i32, %arg1: memref<256x128xf32, #tpu.memory_space<vmem>>, %arg2: memref<256x128xf32, #tpu.memory_space<vmem>>, %arg3: memref<128x128xf32, #tpu.memory_space<vmem>>, %arg4: memref<128x128xf32, #tpu.memory_space<vmem>>, %arg5: memref<1x128xf32, #tpu.memory_space<vmem>>, %arg6: memref<128x128xf32, #tpu.memory_space<vmem>>, %arg7: memref<1x128xf32, #tpu.memory_space<vmem>>, %arg8: memref<256x128xf32, #tpu.memory_space<vmem>>) attributes {dimension_semantics = [#tpu.dimension_semantics<parallel>], iteration_bounds = array<i64: 1>, scalar_prefetch = 0 : i64, scratch_operands = 0 : i64, tpu.core_type = #tpu.core_type<tc>, window_params = [{transform_indices = @transform_0, window_bounds = array<i64: 256, 128>}, {transform_indices = @transform_1, window_bounds = array<i64: 256, 128>}, {pipeline_mode = #tpu.pipeline_mode<synchronous>, transform_indices = @transform_2, window_bounds = array<i64: 128, 128>}, {pipeline_mode = #tpu.pipeline_mode<synchronous>, transform_indices = @transform_3, window_bounds = array<i64: 128, 128>}, {pipeline_mode = #tpu.pipeline_mode<synchronous>, transform_indices = @transform_4, window_bounds = array<i64: 1, 128>}, {pipeline_mode = #tpu.pipeline_mode<synchronous>, transform_indices = @transform_5, window_bounds = array<i64: 128, 128>}, {pipeline_mode = #tpu.pipeline_mode<synchronous>, transform_indices = @transform_6, window_bounds = array<i64: 1, 128>}, {transform_indices = @transform_7, window_bounds = array<i64: 256, 128>}]} {
    %c0 = arith.constant 0 : index
    %c0_0 = arith.constant 0 : index
    %0 = vector.load %arg1[%c0, %c0_0] : memref<256x128xf32, #tpu.memory_space<vmem>>, vector<256x128xf32>
    %1 = arith.truncf %0 : vector<256x128xf32> to vector<256x128xbf16>
    %c0_1 = arith.constant 0 : index
    %c0_2 = arith.constant 0 : index
    %2 = vector.load %arg2[%c0_1, %c0_2] : memref<256x128xf32, #tpu.memory_space<vmem>>, vector<256x128xf32>
    %3 = arith.truncf %2 : vector<256x128xf32> to vector<256x128xbf16>
    %c0_3 = arith.constant 0 : index
    %c0_4 = arith.constant 0 : index
    %4 = vector.load %arg3[%c0_3, %c0_4] : memref<128x128xf32, #tpu.memory_space<vmem>>, vector<128x128xf32>
    %5 = arith.truncf %4 : vector<128x128xf32> to vector<128x128xbf16>
    %c0_5 = arith.constant 0 : index
    %c0_6 = arith.constant 0 : index
    %6 = vector.load %arg4[%c0_5, %c0_6] : memref<128x128xf32, #tpu.memory_space<vmem>>, vector<128x128xf32>
    %7 = arith.truncf %6 : vector<128x128xf32> to vector<128x128xbf16>
    %c0_7 = arith.constant 0 : index
    %c0_8 = arith.constant 0 : index
    %8 = vector.load %arg6[%c0_7, %c0_8] : memref<128x128xf32, #tpu.memory_space<vmem>>, vector<128x128xf32>
    %9 = arith.truncf %8 : vector<128x128xf32> to vector<128x128xbf16>
    %cst = arith.constant dense<0.000000e+00> : vector<256x128xf32>
    %10 = tpu.matmul %1, %5, %cst {dimension_numbers = #tpu.dot_dimension_numbers<[1], [0], [0], [1], [0, 0, 1, 1], [], []>} : vector<256x128xbf16>, vector<128x128xbf16>, vector<256x128xf32> -> vector<256x128xf32>
    %cst_9 = arith.constant dense<0.000000e+00> : vector<256x128xf32>
    %11 = tpu.matmul %3, %7, %cst_9 {dimension_numbers = #tpu.dot_dimension_numbers<[1], [0], [0], [1], [0, 0, 1, 1], [], []>} : vector<256x128xbf16>, vector<128x128xbf16>, vector<256x128xf32> -> vector<256x128xf32>
    %12 = arith.addf %10, %11 : vector<256x128xf32>
    %c0_10 = arith.constant 0 : index
    %c0_11 = arith.constant 0 : index
    %13 = vector.load %arg5[%c0_10, %c0_11] : memref<1x128xf32, #tpu.memory_space<vmem>>, vector<1x128xf32>
    %14 = vector.broadcast %13 : vector<1x128xf32> to vector<256x128xf32>
    %15 = arith.addf %12, %14 : vector<256x128xf32>
    %16 = arith.truncf %15 : vector<256x128xf32> to vector<256x128xbf16>
    %cst_12 = arith.constant dense<0.000000e+00> : vector<256x128xf32>
    %17 = tpu.matmul %16, %9, %cst_12 {dimension_numbers = #tpu.dot_dimension_numbers<[1], [0], [0], [1], [0, 0, 1, 1], [], []>} : vector<256x128xbf16>, vector<128x128xbf16>, vector<256x128xf32> -> vector<256x128xf32>
    %c0_13 = arith.constant 0 : index
    %c0_14 = arith.constant 0 : index
    %18 = vector.load %arg7[%c0_13, %c0_14] : memref<1x128xf32, #tpu.memory_space<vmem>>, vector<1x128xf32>
    %19 = vector.broadcast %18 : vector<1x128xf32> to vector<256x128xf32>
    %20 = arith.addf %17, %19 : vector<256x128xf32>
    %cst_15 = arith.constant 0.000000e+00 : f32
    %21 = vector.broadcast %cst_15 : f32 to vector<256x128xf32>
    %22 = arith.maximumf %20, %21 : vector<256x128xf32>
    %c0_16 = arith.constant 0 : index
    %c0_17 = arith.constant 0 : index
    %23 = vector.load %arg8[%c0_16, %c0_17] : memref<256x128xf32, #tpu.memory_space<vmem>>, vector<256x128xf32>
    tpu.vector_store %arg8[%c0_16, %c0_17], %22 {strides = array<i32>} : memref<256x128xf32, #tpu.memory_space<vmem>>, vector<256x128xf32>,
    return
  }
  func.func @transform_0(%arg0: i32) -> (i32, i32) {
    %c0_i32 = arith.constant 0 : i32
    %c0_i32_0 = arith.constant 0 : i32
    return %arg0, %c0_i32 : i32, i32
  }
  func.func @transform_1(%arg0: i32) -> (i32, i32) {
    %c0_i32 = arith.constant 0 : i32
    %c0_i32_0 = arith.constant 0 : i32
    return %arg0, %c0_i32 : i32, i32
  }
  func.func @transform_2(%arg0: i32) -> (i32, i32) {
    %c0_i32 = arith.constant 0 : i32
    %c0_i32_0 = arith.constant 0 : i32
    %c0_i32_1 = arith.constant 0 : i32
    return %c0_i32, %c0_i32_0 : i32, i32
  }
  func.func @transform_3(%arg0: i32) -> (i32, i32) {
    %c0_i32 = arith.constant 0 : i32
    %c0_i32_0 = arith.constant 0 : i32
    %c0_i32_1 = arith.constant 0 : i32
    return %c0_i32, %c0_i32_0 : i32, i32
  }
  func.func @transform_4(%arg0: i32) -> (i32, i32) {
    %c0_i32 = arith.constant 0 : i32
    %c0_i32_0 = arith.constant 0 : i32
    %c0_i32_1 = arith.constant 0 : i32
    return %c0_i32, %c0_i32_0 : i32, i32
  }
  func.func @transform_5(%arg0: i32) -> (i32, i32) {
    %c0_i32 = arith.constant 0 : i32
    %c0_i32_0 = arith.constant 0 : i32
    %c0_i32_1 = arith.constant 0 : i32
    return %c0_i32, %c0_i32_0 : i32, i32
  }
  func.func @transform_6(%arg0: i32) -> (i32, i32) {
    %c0_i32 = arith.constant 0 : i32
    %c0_i32_0 = arith.constant 0 : i32
    %c0_i32_1 = arith.constant 0 : i32
    return %c0_i32, %c0_i32_0 : i32, i32
  }
  func.func @transform_7(%arg0: i32) -> (i32, i32) {
    %c0_i32 = arith.constant 0 : i32
    %c0_i32_0 = arith.constant 0 : i32
    return %arg0, %c0_i32 : i32, i32
  }
}

</mosaic_0001>

<bundles_post_ra>
// kernel: tpu_custom_call.1
= control target key start
LH: loop header
LB: loop body
LE: loop exit
PB: predicated region body
PF: predicated region fallthrough
CT: control target
= control target key end

     0   :  { %12 = vsyncpa [#allocation3], 0  ;;  %s1057_s0 = inlined_call_operand.hbm [shape: f32[256,128], index: 0, kind: input, shape index: {}]   ;;  %s1058_s1 = inlined_call_operand.hbm [shape: f32[256,128], index: 1, kind: input, shape index: {}]   ;;  %s1059_s2 = inlined_call_operand.hbm [shape: f32[128,128], index: 2, kind: input, shape index: {}]   ;;  %s1060_s3 = inlined_call_operand.hbm [shape: f32[128,128], index: 3, kind: input, shape index: {}]   ;;  %s1061_s4 = inlined_call_operand.vmem [shape: f32[1,128], index: 4, kind: input, shape index: {}]   ;;  %s1062_s5 = inlined_call_operand.hbm [shape: f32[128,128], index: 5, kind: input, shape index: {}]   ;;  %s1063_s6 = inlined_call_operand.vmem [shape: f32[1,128], index: 6, kind: input, shape index: {}]   ;;  %s1064_s7 = inlined_call_operand.hbm [shape: f32[256,128], index: 7, kind: output, shape index: {}]  }
   0x1   :  { %13 = vsyncpa [#allocation6], 0 }
   0x2   :  { %14 = vsyncpa [#allocation9], 0 }
   0x3   :  { %15 = vsyncpa [#allocation4], 0  ;;  %s33_s26 = sshll.u32 %s1058_s1, 4  ;;  %s867_s27 = smov [#allocation5]   ;;  %s34_s26 = int_to_ptr.hbm [resolvable:$true] %s33_s26 }
   0x4   :  { %s35_s28 = sshll.u32 %s867_s27, 4  ;;  %s59_s8 = sshll.u32 %s1060_s3, 4  ;;  %s36_s28 = int_to_ptr.vmem [resolvable:$true] %s35_s28  ;;  %s60_s8 = int_to_ptr.hbm [resolvable:$true] %s59_s8 }
   0x5   :  { %s868_s9 = smov 128   ;;  %s869_s10 = smov 8  }
   0x6   :  { %41 = dma.hbm_to_vmem [thread:$0]  %s34_s26, 4096, %s36_s28, [#allocation6], %s868_s9, %s868_s9, %s869_s10  }
   0x7   :  { %s870_s11 = smov [#allocation8]   ;;  %s20_s1 = sshll.u32 %s1057_s0, 4  ;;  %s21_s1 = int_to_ptr.hbm [resolvable:$true] %s20_s1 }
   0x8   :  { %s61_s12 = sshll.u32 %s870_s11, 4  ;;  %s46_s16 = sshll.u32 %s1059_s2, 4  ;;  %s62_s12 = int_to_ptr.vmem [resolvable:$true] %s61_s12  ;;  %s47_s16 = int_to_ptr.hbm [resolvable:$true] %s46_s16 }
   0x9   :  { %67 = dma.hbm_to_vmem [thread:$0]  %s60_s8, 2048, %s62_s12, [#allocation9], %s868_s9, %s868_s9, %s869_s10  }
   0xa   :  { %s871_s17 = smov [#allocation2]   ;;  %s872_s19 = smov [#allocation7]  }
   0xb   :  { %s22_s18 = sshll.u32 %s871_s17, 4  ;;  %s48_s0 = sshll.u32 %s872_s19, 4  ;;  %s23_s18 = int_to_ptr.vmem [resolvable:$true] %s22_s18  ;;  %s49_s0 = int_to_ptr.vmem [resolvable:$true] %s48_s0 }
   0xc   :  { %28 = dma.hbm_to_vmem [thread:$0]  %s21_s1, 4096, %s23_s18, [#allocation3], %s868_s9, %s868_s9, %s869_s10  }
   0xd   :  { %s74_s22 = sshll.u32 %s1062_s5, 4  ;;  %s873_s2 = smov [#allocation10]   ;;  %s75_s22 = int_to_ptr.hbm [resolvable:$true] %s74_s22 }
   0xe   :  { %54 = dma.hbm_to_vmem [thread:$0]  %s47_s16, 2048, %s49_s0, [#allocation6], %s868_s9, %s868_s9, %s869_s10  }
   0xf   :  { %s76_s23 = sshll.u32 %s873_s2, 4  ;;  %s77_s23 = int_to_ptr.vmem [resolvable:$true] %s76_s23 }
  0x10   :  { %82 = dma.hbm_to_vmem [thread:$0]  %s75_s22, 2048, %s77_s23, [#allocation9], %s868_s9, %s868_s9, %s869_s10  }
  0x11   :  { %859 = dma.done.wait [#allocation3], 4096  }
  0x12   :  { %860 = vsyncadd [#allocation3], 4294963200 }
  0x13   :  { %861 = dma.done.wait [#allocation6], 6144  }
  0x14   :  { %862 = vsyncadd [#allocation6], 4294961152 }
  0x15   :  { %863 = dma.done.wait [#allocation9], 4096  }
  0x16   :  { %864 = vsyncadd [#allocation9], 4294963200  ;;  %v239_v0 = vld [vmem:[#allocation8 + $0x70] sm:$0xff]  ;;  %v240_v1 = vld [vmem:[#allocation8 + $0x78] sm:$0xff]  ;;  %s666_s29 = sshll.u32 %s1064_s7, 4  ;;  %s667_s29 = int_to_ptr.hbm [resolvable:$true] %s666_s29 }
  0x17   :  { %v215_v2 = vld [vmem:[#allocation7 + $0x70] sm:$0xff]  ;;  %v248_v3 = vpack.c.bf16 %v240_v1, %v239_v0  ;;  %v216_v4 = vld [vmem:[#allocation7 + $0x78] sm:$0xff]  ;;  %v237_v5 = vld [vmem:[#allocation8 + $0x60] sm:$0xff] }
  0x18   :  { %v238_v6 = vld [vmem:[#allocation8 + $0x68] sm:$0xff]  ;;  %v945_v7 = vpack.c.bf16 %v216_v4, %v215_v2  ;;  %v213_v8 = vld [vmem:[#allocation7 + $0x60] sm:$0xff]  ;;  %v235_v12 = vld [vmem:[#allocation8 + $0x50] sm:$0xff] }
  0x19   :  { %v214_v9 = vld [vmem:[#allocation7 + $0x68] sm:$0xff]  ;;  %273 = vmatpush.bf16.msra.mxu0 %v248_v3  ;;  %681 = vmatpush.bf16.msra.mxu3 %v248_v3  ;;  %v247_v10 = vpack.c.bf16 %v238_v6, %v237_v5  ;;  %v236_v13 = vld [vmem:[#allocation8 + $0x58] sm:$0xff]  ;;  %v211_v14 = vld [vmem:[#allocation7 + $0x50] sm:$0xff] }
  0x1a   :  { %362 = vmatpush.bf16.msra.mxu1 %v945_v7  ;;  %v948_v11 = vpack.c.bf16 %v214_v9, %v213_v8  ;;  %v212_v15 = vld [vmem:[#allocation7 + $0x58] sm:$0xff]  ;;  %v246_v16 = vpack.c.bf16 %v236_v13, %v235_v12  ;;  %v233_v18 = vld [vmem:[#allocation8 + $0x40] sm:$0xff]  ;;  %v234_v19 = vld [vmem:[#allocation8 + $0x48] sm:$0xff] }
  0x1b   :  { %v222_v17 = vpack.c.bf16 %v212_v15, %v211_v14  ;;  %v209_v20 = vld [vmem:[#allocation7 + $0x40] sm:$0xff]  ;;  %v210_v21 = vld [vmem:[#allocation7 + $0x48] sm:$0xff]  ;;  %v245_v22 = vpack.c.bf16 %v234_v19, %v233_v18  ;;  %v231_v24 = vld [vmem:[#allocation8 + $0x30] sm:$0xff] }
  0x1c   :  { %v221_v23 = vpack.c.bf16 %v210_v21, %v209_v20  ;;  %v232_v25 = vld [vmem:[#allocation8 + $0x38] sm:$0xff]  ;;  %v207_v26 = vld [vmem:[#allocation7 + $0x30] sm:$0xff]  ;;  %v229_v30 = vld [vmem:[#allocation8 + $0x20] sm:$0xff] }
  0x1d   :  { %274 = vmatpush.bf16.msra.mxu0 %v247_v10  ;;  %682 = vmatpush.bf16.msra.mxu3 %v247_v10  ;;  %v208_v27 = vld [vmem:[#allocation7 + $0x38] sm:$0xff]  ;;  %v244_v28 = vpack.c.bf16 %v232_v25, %v231_v24  ;;  %v230_v31 = vld [vmem:[#allocation8 + $0x28] sm:$0xff]  ;;  %v205_v32 = vld [vmem:[#allocation7 + $0x20] sm:$0xff] }
  0x1e   :  { %363 = vmatpush.bf16.msra.mxu1 %v948_v11  ;;  %v220_v29 = vpack.c.bf16 %v208_v27, %v207_v26  ;;  %v206_v33 = vld [vmem:[#allocation7 + $0x28] sm:$0xff]  ;;  %v243_v34 = vpack.c.bf16 %v230_v31, %v229_v30  ;;  %v227_v36 = vld [vmem:[#allocation8 + $0x10] sm:$0xff]  ;;  %v228_v37 = vld [vmem:[#allocation8 + $0x18] sm:$0xff] }
  0x1f   :  { %v219_v35 = vpack.c.bf16 %v206_v33, %v205_v32  ;;  %v203_v38 = vld [vmem:[#allocation7 + $0x10] sm:$0xff]  ;;  %v204_v39 = vld [vmem:[#allocation7 + $0x18] sm:$0xff]  ;;  %v242_v40 = vpack.c.bf16 %v228_v37, %v227_v36  ;;  %v225_v42 = vld [vmem:[#allocation8] sm:$0xff] }
  0x20   :  { %v218_v41 = vpack.c.bf16 %v204_v39, %v203_v38  ;;  %v226_v43 = vld [vmem:[#allocation8 + $0x8] sm:$0xff]  ;;  %v201_v44 = vld [vmem:[#allocation7] sm:$0xff]  ;;  %v155_v57 = vld [vmem:[#allocation5 + $0x10] sm:$0xff] }
  0x21   :  { %275 = vmatpush.bf16.msra.mxu0 %v246_v16  ;;  %683 = vmatpush.bf16.msra.mxu3 %v246_v16  ;;  %v202_v45 = vld [vmem:[#allocation7 + $0x8] sm:$0xff]  ;;  %v153_v46 = vld [vmem:[#allocation5] sm:$0xff]  ;;  %v241_v47 = vpack.c.bf16 %v226_v43, %v225_v42  ;;  %v156_v58 = vld [vmem:[#allocation5 + $0x18] sm:$0xff] }
  0x22   :  { %364 = vmatpush.bf16.msra.mxu1 %v222_v17  ;;  %v154_v48 = vld [vmem:[#allocation5 + $0x8] sm:$0xff]  ;;  %v177_v49 = vld [vmem:[#allocation5 + $0xc0] sm:$0xff]  ;;  %v217_v51 = vpack.c.bf16 %v202_v45, %v201_v44  ;;  %v179_v59 = vld [vmem:[#allocation5 + $0xd0] sm:$0xff]  ;;  %v186_v63 = vpack.c.bf16 %v156_v58, %v155_v57 }
  0x23   :  { %v178_v50 = vld [vmem:[#allocation5 + $0xc8] sm:$0xff]  ;;  %v105_v52 = vld [vmem:[#allocation2] sm:$0xff]  ;;  %v185_v54 = vpack.c.bf16 %v154_v48, %v153_v46  ;;  %v180_v60 = vld [vmem:[#allocation5 + $0xd8] sm:$0xff] }
  0x24   :  { %v106_v53 = vld [vmem:[#allocation2 + $0x8] sm:$0xff]  ;;  %v197_v55 = vpack.c.bf16 %v178_v50, %v177_v49  ;;  %v107_v61 = vld [vmem:[#allocation2 + $0x10] sm:$0xff]  ;;  %v108_v62 = vld [vmem:[#allocation2 + $0x18] sm:$0xff]  ;;  %v198_v0 = vpack.c.bf16 %v180_v60, %v179_v59 }
  0x25   :  { %276 = vmatpush.bf16.msra.mxu0 %v245_v22  ;;  %684 = vmatpush.bf16.msra.mxu3 %v245_v22  ;;  %v137_v56 = vpack.c.bf16 %v106_v53, %v105_v52  ;;  %v138_v1 = vpack.c.bf16 %v108_v62, %v107_v61  ;;  %v157_v2 = vld [vmem:[#allocation5 + $0x20] sm:$0xff]  ;;  %v158_v3 = vld [vmem:[#allocation5 + $0x28] sm:$0xff]  ;;  %v160_v12 = vld [vmem:[#allocation5 + $0x38] sm:$0xff] }
  0x26   :  { %365 = vmatpush.bf16.msra.mxu1 %v221_v23  ;;  %v181_v4 = vld [vmem:[#allocation5 + $0xe0] sm:$0xff]  ;;  %v182_v5 = vld [vmem:[#allocation5 + $0xe8] sm:$0xff]  ;;  %v187_v8 = vpack.c.bf16 %v158_v3, %v157_v2  ;;  %v183_v13 = vld [vmem:[#allocation5 + $0xf0] sm:$0xff] }
  0x27   :  { %v109_v6 = vld [vmem:[#allocation2 + $0x20] sm:$0xff]  ;;  %v199_v9 = vpack.c.bf16 %v182_v5, %v181_v4  ;;  %v184_v14 = vld [vmem:[#allocation5 + $0xf8] sm:$0xff]  ;;  %v111_v15 = vld [vmem:[#allocation2 + $0x30] sm:$0xff] }
  0x28   :  { %v112_v16 = vld [vmem:[#allocation2 + $0x38] sm:$0xff]  ;;  %v200_v18 = vpack.c.bf16 %v184_v14, %v183_v13  ;;  %v161_v20 = vld [vmem:[#allocation5 + $0x40] sm:$0xff]  ;;  %v162_v21 = vld [vmem:[#allocation5 + $0x48] sm:$0xff] }
  0x29   :  { %277 = vmatpush.bf16.msra.mxu0 %v244_v28  ;;  %685 = vmatpush.bf16.msra.mxu3 %v244_v28  ;;  %v140_v19 = vpack.c.bf16 %v112_v16, %v111_v15  ;;  %v129_v22 = vld [vmem:[#allocation2 + $0xc0] sm:$0xff]  ;;  %v114_v25 = vld [vmem:[#allocation2 + $0x48] sm:$0xff]  ;;  %v189_v26 = vpack.c.bf16 %v162_v21, %v161_v20  ;;  %v264_v30 = vld [vmem:[#allocation10 + $0x78] sm:$0xff] }
  0x2a   :  { %366 = vmatpush.bf16.msra.mxu1 %v220_v29  ;;  %v113_v24 = vld [vmem:[#allocation2 + $0x40] sm:$0xff]  ;;  %v163_v32 = vld [vmem:[#allocation5 + $0x50] sm:$0xff]  ;;  %v164_v33 = vld [vmem:[#allocation5 + $0x58] sm:$0xff] }
  0x2b   :  { %v141_v28 = vpack.c.bf16 %v114_v25, %v113_v24  ;;  %v115_v36 = vld [vmem:[#allocation2 + $0x50] sm:$0xff]  ;;  %v116_v37 = vld [vmem:[#allocation2 + $0x58] sm:$0xff]  ;;  %v190_v38 = vpack.c.bf16 %v164_v33, %v163_v32  ;;  %v262_v42 = vld [vmem:[#allocation10 + $0x68] sm:$0xff] }
  0x2c   :  { %v259_v44 = vld [vmem:[#allocation10 + $0x50] sm:$0xff]  ;;  %v260_v45 = vld [vmem:[#allocation10 + $0x58] sm:$0xff]  ;;  %v258_v48 = vld [vmem:[#allocation10 + $0x48] sm:$0xff] }
  0x2d   :  { %278 = vmatpush.bf16.msra.mxu0 %v243_v34  ;;  %686 = vmatpush.bf16.msra.mxu3 %v243_v34  ;;  %v131_v34 = vld [vmem:[#allocation2 + $0xd0] sm:$0xff]  ;;  %v270_v46 = vpack.c.bf16 %v260_v45, %v259_v44  ;;  %v165_v50 = vld [vmem:[#allocation5 + $0x60] sm:$0xff]  ;;  %v134_v53 = vld [vmem:[#allocation2 + $0xe8] sm:$0xff] }
  0x2e   :  { %367 = vmatpush.bf16.msra.mxu1 %v219_v35  ;;  %v133_v52 = vld [vmem:[#allocation2 + $0xe0] sm:$0xff]  ;;  %v256_v57 = vld [vmem:[#allocation10 + $0x38] sm:$0xff]  ;;  %v250_v5 = vld [vmem:[#allocation10 + $0x8] sm:$0xff] }
  0x2f   :  { %v151_v59 = vpack.c.bf16 %v134_v53, %v133_v52  ;;  %v253_v62 = vld [vmem:[#allocation10 + $0x20] sm:$0xff]  ;;  %v252_v2 = vld [vmem:[#allocation10 + $0x18] sm:$0xff]  ;;  %v171_v32 = vld [vmem:[#allocation5 + $0x90] sm:$0xff] }
  0x30   :  { %v249_v4 = vld [vmem:[#allocation10] sm:$0xff]  ;;  %v172_v33 = vld [vmem:[#allocation5 + $0x98] sm:$0xff]  ;;  %v126_v52 = vld [vmem:[#allocation2 + $0xa8] sm:$0xff] }
  0x31   :  { %279 = vmatpush.bf16.msra.mxu0 %v242_v40  ;;  %687 = vmatpush.bf16.msra.mxu3 %v242_v40  ;;  %v142_v40 = vpack.c.bf16 %v116_v37, %v115_v36  ;;  %v169_v16 = vld [vmem:[#allocation5 + $0x80] sm:$0xff] }
  0x32   :  { %368 = vmatpush.bf16.msra.mxu1 %v218_v41 }
  0x35   :  { %280 = vmatpush.bf16.msra.mxu0 %v241_v47  ;;  %688 = vmatpush.bf16.msra.mxu3 %v241_v47  ;;  %v257_v47 = vld [vmem:[#allocation10 + $0x40] sm:$0xff] }
  0x36   :  { %369 = vmatpush.bf16.msra.mxu1 %v217_v51  ;;  %v269_v49 = vpack.c.bf16 %v258_v48, %v257_v47 }
  0x38   :  { %281 = vmatmul.bf16.vlgmr.msra.gmra.mxu0 %v185_v54  ;;  %341 = vmatmul.bf16.vlgmr.msra.gmra.mxu3 %v197_v55  ;;  %v117_v54 = vld [vmem:[#allocation2 + $0x60] sm:$0xff]  ;;  %v118_v55 = vld [vmem:[#allocation2 + $0x68] sm:$0xff] }
  0x39   :  { %689 = vmatpush.bf16.msrb.mxu3 %v945_v7  ;;  %370 = vmatmul.bf16.vlgmr.msra.gmra.mxu1 %v137_v56  ;;  %v110_v7 = vld [vmem:[#allocation2 + $0x28] sm:$0xff]  ;;  %v255_v56 = vld [vmem:[#allocation10 + $0x30] sm:$0xff]  ;;  %v143_v61 = vpack.c.bf16 %v118_v55, %v117_v54 }
  0x3a   :  { %v139_v10 = vpack.c.bf16 %v110_v7, %v109_v6  ;;  %v268_v60 = vpack.c.bf16 %v256_v57, %v255_v56  ;;  %v167_v6 = vld [vmem:[#allocation5 + $0x70] sm:$0xff]  ;;  %v265_v7 = vpack.c.bf16 %v250_v5, %v249_v4  ;;  %v128_v5 = vld [vmem:[#allocation2 + $0xb8] sm:$0xff] }
  0x3b   :  { %v127_v4 = vld [vmem:[#allocation2 + $0xb0] sm:$0xff] }
  0x3d   :  { %690 = vmatpush.bf16.msrb.mxu3 %v948_v11  ;;  %v159_v11 = vld [vmem:[#allocation5 + $0x30] sm:$0xff] }
  0x41   :  { %691 = vmatpush.bf16.msrb.mxu3 %v222_v17  ;;  %v188_v17 = vpack.c.bf16 %v160_v12, %v159_v11  ;;  %v119_v11 = vld [vmem:[#allocation2 + $0x70] sm:$0xff]  ;;  %v120_v12 = vld [vmem:[#allocation2 + $0x78] sm:$0xff] }
  0x42   :  { %v144_v15 = vpack.c.bf16 %v120_v12, %v119_v11 }
  0x45   :  { %692 = vmatpush.bf16.msrb.mxu3 %v221_v23  ;;  %v130_v23 = vld [vmem:[#allocation2 + $0xc8] sm:$0xff] }
  0x46   :  { %v149_v27 = vpack.c.bf16 %v130_v23, %v129_v22 }
  0x48   :  { %286 = vmatmul.bf16.gmra.mxu0 %v186_v63  ;;  %346 = vmatmul.bf16.gmra.mxu3 %v198_v0  ;;  %v254_v63 = vld [vmem:[#allocation10 + $0x28] sm:$0xff] }
  0x49   :  { %693 = vmatpush.bf16.msrb.mxu3 %v220_v29  ;;  %375 = vmatmul.bf16.gmra.mxu1 %v138_v1  ;;  %v263_v29 = vld [vmem:[#allocation10 + $0x70] sm:$0xff]  ;;  %v267_v0 = vpack.c.bf16 %v254_v63, %v253_v62 }
  0x4a   :  { %v272_v31 = vpack.c.bf16 %v264_v30, %v263_v29  ;;  %v251_v1 = vld [vmem:[#allocation10 + $0x10] sm:$0xff] }
  0x4b   :  { %v266_v3 = vpack.c.bf16 %v252_v2, %v251_v1  ;;  %v175_v2 = vld [vmem:[#allocation5 + $0xb0] sm:$0xff] }
  0x4c   :  { %507 = vmatpush.bf16.msra.mxu2 %v272_v31 }
  0x4d   :  { %694 = vmatpush.bf16.msrb.mxu3 %v219_v35  ;;  %v132_v35 = vld [vmem:[#allocation2 + $0xd8] sm:$0xff] }
  0x4e   :  { %v150_v39 = vpack.c.bf16 %v132_v35, %v131_v34  ;;  %v123_v34 = vld [vmem:[#allocation2 + $0x90] sm:$0xff]  ;;  %v124_v35 = vld [vmem:[#allocation2 + $0x98] sm:$0xff] }
  0x51   :  { %695 = vmatpush.bf16.msrb.mxu3 %v218_v41  ;;  %v261_v41 = vld [vmem:[#allocation10 + $0x60] sm:$0xff] }
  0x52   :  { %v271_v43 = vpack.c.bf16 %v262_v42, %v261_v41 }
  0x54   :  { %508 = vmatpush.bf16.msra.mxu2 %v271_v43 }
  0x55   :  { %696 = vmatpush.bf16.msrb.mxu3 %v217_v51  ;;  %v166_v51 = vld [vmem:[#allocation5 + $0x68] sm:$0xff] }
  0x56   :  { %v191_v58 = vpack.c.bf16 %v166_v51, %v165_v50  ;;  %v174_v50 = vld [vmem:[#allocation5 + $0xa8] sm:$0xff]  ;;  %v125_v51 = vld [vmem:[#allocation2 + $0xa0] sm:$0xff] }
  0x57   :  { %v147_v57 = vpack.c.bf16 %v126_v52, %v125_v51 }
  0x58   :  { %291 = vmatmul.bf16.gmra.mxu0 %v187_v8  ;;  %351 = vmatmul.bf16.gmra.mxu3 %v199_v9  ;;  %v168_v8 = vld [vmem:[#allocation5 + $0x78] sm:$0xff]  ;;  %v135_v9 = vld [vmem:[#allocation2 + $0xf0] sm:$0xff] }
  0x59   :  { %380 = vmatmul.bf16.gmra.mxu1 %v139_v10  ;;  %697 = vmatpush.bf16.msra.mxu3 %v272_v31  ;;  %v136_v10 = vld [vmem:[#allocation2 + $0xf8] sm:$0xff]  ;;  %v192_v13 = vpack.c.bf16 %v168_v8, %v167_v6 }
  0x5a   :  { %509 = vmatpush.bf16.msra.mxu2 %v270_v46  ;;  %v152_v14 = vpack.c.bf16 %v136_v10, %v135_v9  ;;  %v148_v10 = vpack.c.bf16 %v128_v5, %v127_v4 }
  0x5d   :  { %698 = vmatpush.bf16.msra.mxu3 %v271_v43 }
  0x5e   :  { %510 = vmatpush.bf16.msra.mxu2 %v269_v49 }
  0x61   :  { %699 = vmatpush.bf16.msra.mxu3 %v270_v46 }
  0x62   :  { %511 = vmatpush.bf16.msra.mxu2 %v268_v60 }
  0x65   :  { %700 = vmatpush.bf16.msra.mxu3 %v269_v49  ;;  %v173_v49 = vld [vmem:[#allocation5 + $0xa0] sm:$0xff] }
  0x66   :  { %512 = vmatpush.bf16.msra.mxu2 %v267_v0  ;;  %v195_v55 = vpack.c.bf16 %v174_v50, %v173_v49 }
  0x68   :  { %296 = vmatmul.bf16.gmra.mxu0 %v188_v17  ;;  %356 = vmatmul.bf16.gmra.mxu3 %v200_v18  ;;  %v170_v17 = vld [vmem:[#allocation5 + $0x88] sm:$0xff]  ;;  %v121_v18 = vld [vmem:[#allocation2 + $0x80] sm:$0xff] }
  0x69   :  { %385 = vmatmul.bf16.gmra.mxu1 %v140_v19  ;;  %701 = vmatpush.bf16.msra.mxu3 %v268_v60  ;;  %v122_v19 = vld [vmem:[#allocation2 + $0x88] sm:$0xff]  ;;  %v193_v20 = vpack.c.bf16 %v170_v17, %v169_v16 }
  0x6a   :  { %513 = vmatpush.bf16.msra.mxu2 %v266_v3  ;;  %v145_v22 = vpack.c.bf16 %v122_v19, %v121_v18 }
  0x6d   :  { %702 = vmatpush.bf16.msra.mxu3 %v267_v0 }
  0x6e   :  { %514 = vmatpush.bf16.msra.mxu2 %v265_v7 }
  0x71   :  { %703 = vmatpush.bf16.msra.mxu3 %v266_v3  ;;  %v176_v3 = vld [vmem:[#allocation5 + $0xb8] sm:$0xff] }
  0x72   :  { %v196_v8 = vpack.c.bf16 %v176_v3, %v175_v2 }
  0x75   :  { %704 = vmatpush.bf16.msra.mxu3 %v265_v7 }
  0x78   :  { %301 = vmatmul.bf16.gmra.mxu0 %v189_v26  ;;  %430 = vmatmul.bf16.vlgmr.msrb.gmra.mxu3 %v149_v27  ;;  %v958_v26 = vld [vmem:[%s1061_s4] ss:$0 sm:$0xff] }
  0x79   :  { %390 = vmatmul.bf16.gmra.mxu1 %v141_v28 }
  0x88   :  { %306 = vmatmul.bf16.gmra.mxu0 %v190_v38  ;;  %435 = vmatmul.bf16.gmra.mxu3 %v150_v39  ;;  %v194_v38 = vpack.c.bf16 %v172_v33, %v171_v32 }
  0x89   :  { %395 = vmatmul.bf16.gmra.mxu1 %v142_v40  ;;  %v146_v40 = vpack.c.bf16 %v124_v35, %v123_v34 }
  0x98   :  { %311 = vmatmul.bf16.gmra.mxu0 %v191_v58  ;;  %440 = vmatmul.bf16.gmra.mxu3 %v151_v59 }
  0x99   :  { %400 = vmatmul.bf16.gmra.mxu1 %v143_v61 }
  0xa8   :  { %316 = vmatmul.bf16.gmra.mxu0 %v192_v13  ;;  %445 = vmatmul.bf16.gmra.mxu3 %v152_v14 }
  0xa9   :  { %405 = vmatmul.bf16.gmra.mxu1 %v144_v15 }
  0xb5   :  { %v282_v21 = vpop.f32.mrf.mxu0 }
  0xb6   :  { %v371_v23 = vpop.f32.mrf.mxu1 }
  0xb7   :  { %v372_v25 = vadd.f32 %v371_v23, %v282_v21 }
  0xb8   :  { %321 = vmatmul.bf16.gmra.mxu0 %v193_v20 }
  0xb9   :  { %410 = vmatmul.bf16.gmra.mxu1 %v145_v22  ;;  %v455_v30 = vadd.f32 %v958_v26, %v372_v25 }
  0xbb   :  { %v953_v24 = vpop.f32.mrf.mxu3 }
  0xbd   :  { %v284_v27 = vpop.f32.mrf.mxu0 }
  0xbe   :  { %v373_v28 = vpop.f32.mrf.mxu1 }
  0xbf   :  { %v374_v29 = vadd.f32 %v373_v28, %v284_v27 }
  0xc1   :  { %v456_v31 = vadd.f32 %v958_v26, %v374_v29 }
  0xc3   :  { %v962_v36 = vpop.f32.mrf.mxu3  ;;  %v487_v37 = vpack.c.bf16 %v456_v31, %v455_v30 }
  0xc5   :  { %515 = vmatmul.bf16.vlgmr.msra.gmra.mxu2 %v487_v37  ;;  %v287_v39 = vpop.f32.mrf.mxu0 }
  0xc6   :  { %v376_v41 = vpop.f32.mrf.mxu1 }
  0xc7   :  { %v377_v43 = vadd.f32 %v376_v41, %v287_v39 }
  0xc8   :  { %326 = vmatmul.bf16.gmra.mxu0 %v194_v38 }
  0xc9   :  { %415 = vmatmul.bf16.gmra.mxu1 %v146_v40  ;;  %v457_v47 = vadd.f32 %v958_v26, %v377_v43 }
  0xcb   :  { %v964_v42 = vpop.f32.mrf.mxu3 }
  0xcd   :  { %v289_v44 = vpop.f32.mrf.mxu0 }
  0xce   :  { %v378_v45 = vpop.f32.mrf.mxu1 }
  0xcf   :  { %v379_v46 = vadd.f32 %v378_v45, %v289_v44 }
  0xd1   :  { %v458_v48 = vadd.f32 %v958_v26, %v379_v46 }
  0xd3   :  { %v968_v53 = vpop.f32.mrf.mxu3  ;;  %v488_v54 = vpack.c.bf16 %v458_v48, %v457_v47 }
  0xd5   :  { %520 = vmatmul.bf16.gmra.mxu2 %v488_v54  ;;  %v292_v56 = vpop.f32.mrf.mxu0 }
  0xd6   :  { %v381_v58 = vpop.f32.mrf.mxu1 }
  0xd7   :  { %v382_v60 = vadd.f32 %v381_v58, %v292_v56 }
  0xd8   :  { %331 = vmatmul.bf16.gmra.mxu0 %v195_v55 }
  0xd9   :  { %420 = vmatmul.bf16.gmra.mxu1 %v147_v57  ;;  %v459_v0 = vadd.f32 %v958_v26, %v382_v60 }
  0xdb   :  { %v970_v59 = vpop.f32.mrf.mxu3 }
  0xdd   :  { %v294_v61 = vpop.f32.mrf.mxu0 }
  0xde   :  { %v383_v62 = vpop.f32.mrf.mxu1 }
  0xdf   :  { %v384_v63 = vadd.f32 %v383_v62, %v294_v61 }
  0xe1   :  { %v460_v1 = vadd.f32 %v958_v26, %v384_v63 }
  0xe3   :  { %v974_v6 = vpop.f32.mrf.mxu3  ;;  %v489_v7 = vpack.c.bf16 %v460_v1, %v459_v0 }
  0xe5   :  { %525 = vmatmul.bf16.gmra.mxu2 %v489_v7  ;;  %v297_v9 = vpop.f32.mrf.mxu0 }
  0xe6   :  { %v386_v11 = vpop.f32.mrf.mxu1 }
  0xe7   :  { %v387_v13 = vadd.f32 %v386_v11, %v297_v9 }
  0xe8   :  { %336 = vmatmul.bf16.gmra.mxu0 %v196_v8 }
  0xe9   :  { %425 = vmatmul.bf16.gmra.mxu1 %v148_v10  ;;  %v461_v17 = vadd.f32 %v958_v26, %v387_v13 }
  0xeb   :  { %v976_v12 = vpop.f32.mrf.mxu3 }
  0xed   :  { %v299_v14 = vpop.f32.mrf.mxu0 }
  0xee   :  { %v388_v15 = vpop.f32.mrf.mxu1 }
  0xef   :  { %v389_v16 = vadd.f32 %v388_v15, %v299_v14 }
  0xf1   :  { %v462_v18 = vadd.f32 %v958_v26, %v389_v16 }
  0xf3   :  { %v980_v19 = vpop.f32.mrf.mxu3  ;;  %v490_v20 = vpack.c.bf16 %v462_v18, %v461_v17 }
  0xf5   :  { %530 = vmatmul.bf16.gmra.mxu2 %v490_v20  ;;  %v302_v21 = vpop.f32.mrf.mxu0 }
  0xf6   :  { %v391_v22 = vpop.f32.mrf.mxu1 }
  0xf7   :  { %v392_v25 = vadd.f32 %v391_v22, %v302_v21 }
  0xf9   :  { %v463_v30 = vadd.f32 %v958_v26, %v392_v25 }
  0xfb   :  { %v431_v23 = vpop.f32.mrf.mxu3 }
  0xfc   :  { %v432_v32 = vadd.f32 %v431_v23, %v953_v24 }
  0xfd   :  { %v304_v27 = vpop.f32.mrf.mxu0 }
  0xfe   :  { %v393_v28 = vpop.f32.mrf.mxu1  ;;  %v479_v38 = vadd.f32 %v958_v26, %v432_v32 }
  0xff   :  { %v394_v29 = vadd.f32 %v393_v28, %v304_v27 }
 0x101   :  { %v464_v31 = vadd.f32 %v958_v26, %v394_v29 }
 0x103   :  { %v433_v33 = vpop.f32.mrf.mxu3  ;;  %v491_v34 = vpack.c.bf16 %v464_v31, %v463_v30 }
 0x104   :  { %v434_v35 = vadd.f32 %v433_v33, %v962_v36 }
 0x105   :  { %535 = vmatmul.bf16.gmra.mxu2 %v491_v34  ;;  %v307_v37 = vpop.f32.mrf.mxu0  ;;  %v1011_v34 = vld [vmem:[%s1063_s6] ss:$0 sm:$0xff]  ;;  %s874_s6 = smov [#allocation11]  }
 0x106   :  { %v480_v39 = vadd.f32 %v958_v26, %v434_v35  ;;  %v396_v40 = vpop.f32.mrf.mxu1  ;;  %s664_s26 = sshll.u32 %s874_s6, 4  ;;  %s665_s26 = int_to_ptr.vmem [resolvable:$true] %s664_s26 }
 0x107   :  { %v397_v44 = vadd.f32 %v396_v40, %v307_v37 }
 0x108   :  { %v499_v41 = vpack.c.bf16 %v480_v39, %v479_v38 }
 0x109   :  { %v465_v24 = vadd.f32 %v958_v26, %v397_v44 }
 0x10a   :  { %575 = vmatmul.bf16.vlgmr.msra.gmra.mxu3 %v499_v41 }
 0x10b   :  { %v436_v43 = vpop.f32.mrf.mxu3 }
 0x10c   :  { %v437_v36 = vadd.f32 %v436_v43, %v964_v42 }
 0x10d   :  { %v309_v45 = vpop.f32.mrf.mxu0 }
 0x10e   :  { %v398_v46 = vpop.f32.mrf.mxu1  ;;  %v481_v54 = vadd.f32 %v958_v26, %v437_v36 }
 0x10f   :  { %v399_v47 = vadd.f32 %v398_v46, %v309_v45 }
 0x111   :  { %v466_v48 = vadd.f32 %v958_v26, %v399_v47 }
 0x113   :  { %v438_v49 = vpop.f32.mrf.mxu3  ;;  %v492_v50 = vpack.c.bf16 %v466_v48, %v465_v24 }
 0x114   :  { %v439_v51 = vadd.f32 %v438_v49, %v968_v53 }
 0x115   :  { %540 = vmatmul.bf16.gmra.mxu2 %v492_v50  ;;  %v312_v52 = vpop.f32.mrf.mxu0 }
 0x116   :  { %v482_v55 = vadd.f32 %v958_v26, %v439_v51  ;;  %v401_v56 = vpop.f32.mrf.mxu1 }
 0x117   :  { %v402_v60 = vadd.f32 %v401_v56, %v312_v52 }
 0x118   :  { %v500_v57 = vpack.c.bf16 %v482_v55, %v481_v54 }
 0x119   :  { %v467_v42 = vadd.f32 %v958_v26, %v402_v60 }
 0x11a   :  { %580 = vmatmul.bf16.gmra.mxu3 %v500_v57 }
 0x11b   :  { %v441_v58 = vpop.f32.mrf.mxu3 }
 0x11c   :  { %v442_v53 = vadd.f32 %v441_v58, %v970_v59 }
 0x11d   :  { %v314_v61 = vpop.f32.mrf.mxu0 }
 0x11e   :  { %v403_v62 = vpop.f32.mrf.mxu1  ;;  %v483_v5 = vadd.f32 %v958_v26, %v442_v53 }
 0x11f   :  { %v404_v63 = vadd.f32 %v403_v62, %v314_v61 }
 0x121   :  { %v468_v0 = vadd.f32 %v958_v26, %v404_v63 }
 0x123   :  { %v443_v1 = vpop.f32.mrf.mxu3  ;;  %v493_v2 = vpack.c.bf16 %v468_v0, %v467_v42 }
 0x124   :  { %v444_v3 = vadd.f32 %v443_v1, %v974_v6 }
 0x125   :  { %545 = vmatmul.bf16.gmra.mxu2 %v493_v2  ;;  %v317_v4 = vpop.f32.mrf.mxu0 }
 0x126   :  { %v484_v7 = vadd.f32 %v958_v26, %v444_v3  ;;  %v406_v8 = vpop.f32.mrf.mxu1 }
 0x127   :  { %v407_v11 = vadd.f32 %v406_v8, %v317_v4 }
 0x128   :  { %v501_v9 = vpack.c.bf16 %v484_v7, %v483_v5 }
 0x129   :  { %v469_v59 = vadd.f32 %v958_v26, %v407_v11 }
 0x12a   :  { %585 = vmatmul.bf16.gmra.mxu3 %v501_v9 }
 0x12b   :  { %v446_v10 = vpop.f32.mrf.mxu3 }
 0x12c   :  { %v447_v6 = vadd.f32 %v446_v10, %v976_v12 }
 0x12d   :  { %v319_v13 = vpop.f32.mrf.mxu0 }
 0x12e   :  { %v408_v14 = vpop.f32.mrf.mxu1  ;;  %v485_v22 = vadd.f32 %v958_v26, %v447_v6 }
 0x12f   :  { %v409_v15 = vadd.f32 %v408_v14, %v319_v13 }
 0x131   :  { %v470_v16 = vadd.f32 %v958_v26, %v409_v15 }
 0x133   :  { %v448_v17 = vpop.f32.mrf.mxu3  ;;  %v494_v18 = vpack.c.bf16 %v470_v16, %v469_v59 }
 0x134   :  { %v449_v20 = vadd.f32 %v448_v17, %v980_v19 }
 0x135   :  { %550 = vmatmul.bf16.gmra.mxu2 %v494_v18  ;;  %v322_v21 = vpop.f32.mrf.mxu0 }
 0x136   :  { %v486_v23 = vadd.f32 %v958_v26, %v449_v20  ;;  %v411_v25 = vpop.f32.mrf.mxu1 }
 0x137   :  { %v412_v28 = vadd.f32 %v411_v25, %v322_v21 }
 0x138   :  { %v502_v27 = vpack.c.bf16 %v486_v23, %v485_v22 }
 0x139   :  { %v471_v32 = vadd.f32 %v958_v26, %v412_v28 }
 0x13a   :  { %590 = vmatmul.bf16.gmra.mxu3 %v502_v27 }
 0x13d   :  { %v324_v29 = vpop.f32.mrf.mxu0 }
 0x13e   :  { %v413_v30 = vpop.f32.mrf.mxu1 }
 0x13f   :  { %v414_v31 = vadd.f32 %v413_v30, %v324_v29 }
 0x141   :  { %v472_v12 = vadd.f32 %v958_v26, %v414_v31 }
 0x143   :  { %v495_v33 = vpack.c.bf16 %v472_v12, %v471_v32 }
 0x145   :  { %555 = vmatmul.bf16.gmra.mxu2 %v495_v33  ;;  %v327_v19 = vpop.f32.mrf.mxu0 }
 0x146   :  { %v416_v35 = vpop.f32.mrf.mxu1 }
 0x147   :  { %v417_v40 = vadd.f32 %v416_v35, %v327_v19 }
 0x148   :  { %v516_v37 = vpop.f32.mrf.mxu2 }
 0x149   :  { %v517_v38 = vadd.f32 %v1011_v34, %v516_v37  ;;  %v473_v46 = vadd.f32 %v958_v26, %v417_v40 }
 0x14b   :  { %v596_v39 = vmax.f32 %v517_v38, 0.0 }
 0x14d   :  { %628 = vst [vmem:[#allocation11] sm:$0xff] %v596_v39  ;;  %v329_v41 = vpop.f32.mrf.mxu0 }
 0x14e   :  { %v418_v43 = vpop.f32.mrf.mxu1 }
 0x14f   :  { %v419_v44 = vadd.f32 %v418_v43, %v329_v41 }
 0x150   :  { %v518_v45 = vpop.f32.mrf.mxu2 }
 0x151   :  { %v474_v47 = vadd.f32 %v958_v26, %v419_v44  ;;  %v519_v24 = vadd.f32 %v1011_v34, %v518_v45 }
 0x153   :  { %v597_v48 = vmax.f32 %v519_v24, 0.0  ;;  %v496_v36 = vpack.c.bf16 %v474_v47, %v473_v46 }
 0x155   :  { %629 = vst [vmem:[#allocation11 + $0x8] sm:$0xff] %v597_v48  ;;  %560 = vmatmul.bf16.gmra.mxu2 %v496_v36  ;;  %v332_v49 = vpop.f32.mrf.mxu0 }
 0x156   :  { %v421_v50 = vpop.f32.mrf.mxu1 }
 0x157   :  { %v422_v55 = vadd.f32 %v421_v50, %v332_v49 }
 0x158   :  { %v521_v51 = vpop.f32.mrf.mxu2 }
 0x159   :  { %v522_v52 = vadd.f32 %v1011_v34, %v521_v51  ;;  %v475_v61 = vadd.f32 %v958_v26, %v422_v55 }
 0x15b   :  { %v598_v54 = vmax.f32 %v522_v52, 0.0 }
 0x15d   :  { %630 = vst [vmem:[#allocation11 + $0x10] sm:$0xff] %v598_v54  ;;  %v334_v56 = vpop.f32.mrf.mxu0 }
 0x15e   :  { %v423_v57 = vpop.f32.mrf.mxu1 }
 0x15f   :  { %v424_v58 = vadd.f32 %v423_v57, %v334_v56 }
 0x160   :  { %v523_v60 = vpop.f32.mrf.mxu2 }
 0x161   :  { %v476_v62 = vadd.f32 %v958_v26, %v424_v58  ;;  %v524_v63 = vadd.f32 %v1011_v34, %v523_v60 }
 0x163   :  { %v599_v42 = vmax.f32 %v524_v63, 0.0  ;;  %v497_v0 = vpack.c.bf16 %v476_v62, %v475_v61 }
 0x165   :  { %631 = vst [vmem:[#allocation11 + $0x18] sm:$0xff] %v599_v42  ;;  %565 = vmatmul.bf16.gmra.mxu2 %v497_v0  ;;  %v337_v53 = vpop.f32.mrf.mxu0 }
 0x166   :  { %v426_v1 = vpop.f32.mrf.mxu1 }
 0x167   :  { %v427_v5 = vadd.f32 %v426_v1, %v337_v53 }
 0x168   :  { %v526_v2 = vpop.f32.mrf.mxu2 }
 0x169   :  { %v527_v3 = vadd.f32 %v1011_v34, %v526_v2  ;;  %v477_v11 = vadd.f32 %v958_v26, %v427_v5 }
 0x16b   :  { %v600_v4 = vmax.f32 %v527_v3, 0.0 }
 0x16d   :  { %632 = vst [vmem:[#allocation11 + $0x20] sm:$0xff] %v600_v4  ;;  %v339_v7 = vpop.f32.mrf.mxu0 }
 0x16e   :  { %v428_v8 = vpop.f32.mrf.mxu1 }
 0x16f   :  { %v429_v9 = vadd.f32 %v428_v8, %v339_v7 }
 0x170   :  { %v528_v10 = vpop.f32.mrf.mxu2 }
 0x171   :  { %v478_v13 = vadd.f32 %v958_v26, %v429_v9  ;;  %v529_v14 = vadd.f32 %v1011_v34, %v528_v10 }
 0x173   :  { %v601_v15 = vmax.f32 %v529_v14, 0.0  ;;  %v498_v59 = vpack.c.bf16 %v478_v13, %v477_v11 }
 0x175   :  { %633 = vst [vmem:[#allocation11 + $0x28] sm:$0xff] %v601_v15  ;;  %570 = vmatmul.bf16.gmra.mxu2 %v498_v59 }
 0x178   :  { %v531_v16 = vpop.f32.mrf.mxu2 }
 0x179   :  { %v532_v6 = vadd.f32 %v1011_v34, %v531_v16 }
 0x17b   :  { %v602_v17 = vmax.f32 %v532_v6, 0.0 }
 0x17d   :  { %634 = vst [vmem:[#allocation11 + $0x30] sm:$0xff] %v602_v17 }
 0x180   :  { %v533_v18 = vpop.f32.mrf.mxu2 }
 0x181   :  { %v534_v20 = vadd.f32 %v1011_v34, %v533_v18 }
 0x183   :  { %v603_v21 = vmax.f32 %v534_v20, 0.0 }
 0x185   :  { %635 = vst [vmem:[#allocation11 + $0x38] sm:$0xff] %v603_v21 }
 0x188   :  { %v536_v22 = vpop.f32.mrf.mxu2 }
 0x189   :  { %v537_v23 = vadd.f32 %v1011_v34, %v536_v22 }
 0x18b   :  { %v604_v26 = vmax.f32 %v537_v23, 0.0 }
 0x18d   :  { %636 = vst [vmem:[#allocation11 + $0x40] sm:$0xff] %v604_v26  ;;  %v576_v25 = vpop.f32.mrf.mxu3 }
 0x18e   :  { %v577_v27 = vadd.f32 %v1011_v34, %v576_v25 }
 0x190   :  { %v620_v28 = vmax.f32 %v577_v27, 0.0  ;;  %v538_v29 = vpop.f32.mrf.mxu2 }
 0x191   :  { %v539_v30 = vadd.f32 %v1011_v34, %v538_v29 }
 0x192   :  { %652 = vst [vmem:[#allocation11 + $0xc0] sm:$0xff] %v620_v28 }
 0x193   :  { %v605_v31 = vmax.f32 %v539_v30, 0.0 }
 0x195   :  { %637 = vst [vmem:[#allocation11 + $0x48] sm:$0xff] %v605_v31  ;;  %v578_v32 = vpop.f32.mrf.mxu3 }
 0x196   :  { %v579_v12 = vadd.f32 %v1011_v34, %v578_v32 }
 0x198   :  { %v621_v33 = vmax.f32 %v579_v12, 0.0  ;;  %v541_v19 = vpop.f32.mrf.mxu2 }
 0x199   :  { %v542_v35 = vadd.f32 %v1011_v34, %v541_v19 }
 0x19a   :  { %653 = vst [vmem:[#allocation11 + $0xc8] sm:$0xff] %v621_v33 }
 0x19b   :  { %v606_v37 = vmax.f32 %v542_v35, 0.0 }
 0x19d   :  { %638 = vst [vmem:[#allocation11 + $0x50] sm:$0xff] %v606_v37  ;;  %v581_v38 = vpop.f32.mrf.mxu3 }
 0x19e   :  { %v582_v39 = vadd.f32 %v1011_v34, %v581_v38 }
 0x1a0   :  { %v622_v40 = vmax.f32 %v582_v39, 0.0  ;;  %v543_v41 = vpop.f32.mrf.mxu2 }
 0x1a1   :  { %v544_v43 = vadd.f32 %v1011_v34, %v543_v41 }
 0x1a2   :  { %654 = vst [vmem:[#allocation11 + $0xd0] sm:$0xff] %v622_v40 }
 0x1a3   :  { %v607_v44 = vmax.f32 %v544_v43, 0.0 }
 0x1a5   :  { %639 = vst [vmem:[#allocation11 + $0x58] sm:$0xff] %v607_v44  ;;  %v583_v45 = vpop.f32.mrf.mxu3 }
 0x1a6   :  { %v584_v46 = vadd.f32 %v1011_v34, %v583_v45 }
 0x1a8   :  { %v623_v47 = vmax.f32 %v584_v46, 0.0  ;;  %v546_v24 = vpop.f32.mrf.mxu2 }
 0x1a9   :  { %v547_v48 = vadd.f32 %v1011_v34, %v546_v24 }
 0x1aa   :  { %655 = vst [vmem:[#allocation11 + $0xd8] sm:$0xff] %v623_v47 }
 0x1ab   :  { %v608_v36 = vmax.f32 %v547_v48, 0.0 }
 0x1ad   :  { %640 = vst [vmem:[#allocation11 + $0x60] sm:$0xff] %v608_v36  ;;  %v586_v49 = vpop.f32.mrf.mxu3 }
 0x1ae   :  { %v587_v50 = vadd.f32 %v1011_v34, %v586_v49 }
 0x1b0   :  { %v624_v51 = vmax.f32 %v587_v50, 0.0  ;;  %v548_v52 = vpop.f32.mrf.mxu2 }
 0x1b1   :  { %v549_v54 = vadd.f32 %v1011_v34, %v548_v52 }
 0x1b2   :  { %656 = vst [vmem:[#allocation11 + $0xe0] sm:$0xff] %v624_v51 }
 0x1b3   :  { %v609_v55 = vmax.f32 %v549_v54, 0.0 }
 0x1b5   :  { %641 = vst [vmem:[#allocation11 + $0x68] sm:$0xff] %v609_v55  ;;  %v588_v56 = vpop.f32.mrf.mxu3 }
 0x1b6   :  { %v589_v57 = vadd.f32 %v1011_v34, %v588_v56 }
 0x1b8   :  { %v625_v58 = vmax.f32 %v589_v57, 0.0  ;;  %v551_v60 = vpop.f32.mrf.mxu2 }
 0x1b9   :  { %v552_v61 = vadd.f32 %v1011_v34, %v551_v60 }
 0x1ba   :  { %657 = vst [vmem:[#allocation11 + $0xe8] sm:$0xff] %v625_v58 }
 0x1bb   :  { %v610_v62 = vmax.f32 %v552_v61, 0.0 }
 0x1bd   :  { %642 = vst [vmem:[#allocation11 + $0x70] sm:$0xff] %v610_v62  ;;  %v591_v63 = vpop.f32.mrf.mxu3 }
 0x1be   :  { %v592_v42 = vadd.f32 %v1011_v34, %v591_v63 }
 0x1c0   :  { %v626_v0 = vmax.f32 %v592_v42, 0.0  ;;  %v553_v53 = vpop.f32.mrf.mxu2 }
 0x1c1   :  { %v554_v1 = vadd.f32 %v1011_v34, %v553_v53 }
 0x1c2   :  { %658 = vst [vmem:[#allocation11 + $0xf0] sm:$0xff] %v626_v0 }
 0x1c3   :  { %v611_v2 = vmax.f32 %v554_v1, 0.0 }
 0x1c5   :  { %643 = vst [vmem:[#allocation11 + $0x78] sm:$0xff] %v611_v2  ;;  %v593_v3 = vpop.f32.mrf.mxu3 }
 0x1c6   :  { %v594_v4 = vadd.f32 %v1011_v34, %v593_v3 }
 0x1c8   :  { %v627_v5 = vmax.f32 %v594_v4, 0.0  ;;  %v556_v7 = vpop.f32.mrf.mxu2 }
 0x1c9   :  { %v557_v8 = vadd.f32 %v1011_v34, %v556_v7 }
 0x1ca   :  { %659 = vst [vmem:[#allocation11 + $0xf8] sm:$0xff] %v627_v5 }
 0x1cb   :  { %v612_v9 = vmax.f32 %v557_v8, 0.0 }
 0x1cd   :  { %644 = vst [vmem:[#allocation11 + $0x80] sm:$0xff] %v612_v9 }
 0x1d0   :  { %v558_v10 = vpop.f32.mrf.mxu2 }
 0x1d1   :  { %v559_v11 = vadd.f32 %v1011_v34, %v558_v10 }
 0x1d3   :  { %v613_v13 = vmax.f32 %v559_v11, 0.0 }
 0x1d5   :  { %645 = vst [vmem:[#allocation11 + $0x88] sm:$0xff] %v613_v13 }
 0x1d8   :  { %v561_v14 = vpop.f32.mrf.mxu2 }
 0x1d9   :  { %v562_v15 = vadd.f32 %v1011_v34, %v561_v14 }
 0x1db   :  { %v614_v59 = vmax.f32 %v562_v15, 0.0 }
 0x1dd   :  { %646 = vst [vmem:[#allocation11 + $0x90] sm:$0xff] %v614_v59 }
 0x1e0   :  { %v563_v16 = vpop.f32.mrf.mxu2 }
 0x1e1   :  { %v564_v6 = vadd.f32 %v1011_v34, %v563_v16 }
 0x1e3   :  { %v615_v17 = vmax.f32 %v564_v6, 0.0 }
 0x1e5   :  { %647 = vst [vmem:[#allocation11 + $0x98] sm:$0xff] %v615_v17 }
 0x1e8   :  { %v566_v18 = vpop.f32.mrf.mxu2 }
 0x1e9   :  { %v567_v20 = vadd.f32 %v1011_v34, %v566_v18 }
 0x1eb   :  { %v616_v21 = vmax.f32 %v567_v20, 0.0 }
 0x1ed   :  { %648 = vst [vmem:[#allocation11 + $0xa0] sm:$0xff] %v616_v21 }
 0x1f0   :  { %v568_v22 = vpop.f32.mrf.mxu2 }
 0x1f1   :  { %v569_v23 = vadd.f32 %v1011_v34, %v568_v22 }
 0x1f3   :  { %v617_v26 = vmax.f32 %v569_v23, 0.0 }
 0x1f5   :  { %649 = vst [vmem:[#allocation11 + $0xa8] sm:$0xff] %v617_v26 }
 0x1f8   :  { %v571_v25 = vpop.f32.mrf.mxu2 }
 0x1f9   :  { %v572_v27 = vadd.f32 %v1011_v34, %v571_v25 }
 0x1fb   :  { %v618_v28 = vmax.f32 %v572_v27, 0.0 }
 0x1fd   :  { %650 = vst [vmem:[#allocation11 + $0xb0] sm:$0xff] %v618_v28 }
 0x200   :  { %v573_v29 = vpop.f32.mrf.mxu2 }
 0x201   :  { %v574_v30 = vadd.f32 %v1011_v34, %v573_v29 }
 0x203   :  { %v619_v31 = vmax.f32 %v574_v30, 0.0 }
 0x205   :  { %651 = vst [vmem:[#allocation11 + $0xb8] sm:$0xff] %v619_v31 }
 0x206   :  { %672 = dma.vmem_to_hbm [thread:$0]  %s665_s26, 4096, %s667_s29, [#allocation4], %s868_s9, %s868_s9, %s869_s10  }
 0x207   :  { %865 = dma.done.wait [#allocation4], 4096  }
 0x208   :  { %866 = vsyncadd [#allocation4], 4294963200 }
 0x209   :  { %677 = vsyncpa [#allocation3], 1 }
 0x20a   :  { %678 = vsyncpa [#allocation6], 1 }
 0x20b   :  { %679 = vsyncpa [#allocation9], 1 }
 0x20c   :  { %680 = vsyncpa [#allocation4], 1 }

</bundles_post_ra>
